<compile_context>
chip_gen: v6e
topology: v6e:2x2x1
jax: 0.10.0
libtpu: 0.0.40
codegen_flags: <defaults>
</compile_context>

<pallas_src>
import jax
import jax.numpy as jnp
import numpy as np
from jax.experimental import pallas as pl
from jax.experimental.pallas import tpu as pltpu

EPS = 1e-8
QMIN = -128.0
QMAX = 127.0


def _mlgru_kernel(x_ref, w_ref, b_ref, o_ref, h_ref):
    t = pl.program_id(0)

    # h_0 = zeros
    @pl.when(t == 0)
    def _():
        h_ref[...] = jnp.zeros_like(h_ref)

    x_t = x_ref[0].astype(jnp.float32)                       # (B, D)
    D = x_t.shape[-1]

    # --- rms_norm (RMSNormFunction.forward) -------------------------------
    mean = jnp.mean(x_t, axis=-1, keepdims=True)
    var = jnp.mean((x_t - mean) ** 2, axis=-1, keepdims=True)  # unbiased=False
    r = jax.lax.rsqrt(jnp.maximum(var + EPS, 1e-10))
    y = r * (x_t - mean)

    # --- activation_quant: global abs-max over this timestep's (B, D) slab -
    y = jnp.where(jnp.isnan(y), 0.0, y)                      # nan_to_num
    absmax = jnp.max(jnp.abs(y))
    valid = absmax > 0.0                                     # False for 0 / NaN
    scale = jnp.where(valid, absmax * (1.0 / QMAX), 1.0)     # scalar
    inv_scale = jnp.where(valid, QMAX / absmax, 1.0)         # one scalar recip
    q = jnp.clip(jnp.round(y * inv_scale), QMIN, QMAX)       # integer-valued

    # --- fused ternary matmul on the MXU -----------------------------------
    # q is exactly representable in bf16 (|q| <= 128), weights are {-1,0,1};
    # accumulate in f32, then apply the scalar scale + fused bias.
    acc = jnp.dot(q.astype(jnp.bfloat16), w_ref[...],
                  preferred_element_type=jnp.float32)        # (B, 3D)
    lin = acc * scale + b_ref[...]                           # (B, 3D) + (1, 3D)

    f_lin = lin[:, :D]
    c_lin = lin[:, D:2 * D]
    g_lin = lin[:, 2 * D:]

    sig_f = jax.nn.sigmoid(f_lin)
    silu_c = c_lin * jax.nn.sigmoid(c_lin)
    sig_g = jax.nn.sigmoid(g_lin)

    h_prev = h_ref[...]
    h_new = sig_f * h_prev + (1.0 - sig_f) * silu_c
    h_ref[...] = h_new
    o_ref[0] = (h_new * sig_g).astype(o_ref.dtype)


def mlgru_layer(x, W_f, W_c, W_g, b_f, b_c, b_g):
    """x: (B, S, D) float32; W_*: (D, D); b_*: (D,). Returns o: (B, S, D)."""
    B, S, D = x.shape

    # Ternarize + transpose + fuse the three projections once, wrapper-side.
    w_fused = jnp.concatenate(
        [jnp.sign(W_f).T, jnp.sign(W_c).T, jnp.sign(W_g).T], axis=1
    ).astype(jnp.bfloat16)                                   # (D, 3D)
    b_fused = jnp.concatenate([b_f, b_c, b_g]).reshape(1, 3 * D).astype(jnp.float32)

    # Time-major so each grid step streams one contiguous (B, D) slab.
    x_tm = jnp.transpose(x, (1, 0, 2)).astype(jnp.float32)   # (S, B, D)

    out = pl.pallas_call(
        _mlgru_kernel,
        out_shape=jax.ShapeDtypeStruct((S, B, D), jnp.float32),
        grid_spec=pltpu.PrefetchScalarGridSpec(
            num_scalar_prefetch=0,
            grid=(S,),
            in_specs=[
                pl.BlockSpec((1, B, D), lambda t: (t, 0, 0)),    # x_t (pipelined)
                pl.BlockSpec((D, 3 * D), lambda t: (0, 0)),      # fused W (resident)
                pl.BlockSpec((1, 3 * D), lambda t: (0, 0)),      # fused bias (resident)
            ],
            out_specs=pl.BlockSpec((1, B, D), lambda t: (t, 0, 0)),
            scratch_shapes=[pltpu.VMEM((B, D), jnp.float32)],    # h carry
        ),
        compiler_params=pltpu.CompilerParams(
            # The h_t recurrence makes the time axis sequential.
            dimension_semantics=("arbitrary",),
        ),
    )(x_tm, w_fused, b_fused)

    return jnp.transpose(out, (1, 0, 2))                      # (B, S, D)


# ---------------------------- pure-JAX reference ----------------------------

def _activation_quant_ref(v, bits=8):
    qmin = -(2.0 ** (bits - 1))
    qmax = 2.0 ** (bits - 1) - 1.0
    v = jnp.where(jnp.isnan(v), 0.0, v)
    x_abs_max = jnp.max(jnp.abs(v))
    scale = jnp.where(
        jnp.logical_or(x_abs_max == 0.0, jnp.isnan(x_abs_max)),
        jnp.float32(1.0),
        x_abs_max / qmax,
    )
    q = jnp.clip(jnp.round(v / scale), qmin, qmax)
    return q * scale


def _reference(x, W_f, W_c, W_g, b_f, b_c, b_g):
    B, S, D = x.shape
    Wf_s, Wc_s, Wg_s = jnp.sign(W_f), jnp.sign(W_c), jnp.sign(W_g)
    h = jnp.zeros((B, D), jnp.float32)
    outs = []
    for t in range(S):
        x_t = x[:, t, :]
        mean = jnp.mean(x_t, axis=-1, keepdims=True)
        var = jnp.mean((x_t - mean) ** 2, axis=-1, keepdims=True)
        r = 1.0 / jnp.sqrt(jnp.maximum(var + EPS, 1e-10))
        y = r * (x_t - mean)
        yq = _activation_quant_ref(y)
        f = yq @ Wf_s.T + b_f
        c = yq @ Wc_s.T + b_c
        g = yq @ Wg_s.T + b_g
        sig_f = jax.nn.sigmoid(f)
        silu_c = c * jax.nn.sigmoid(c)
        sig_g = jax.nn.sigmoid(g)
        h = sig_f * h + (1.0 - sig_f) * silu_c
        outs.append((h * sig_g)[:, None, :])
    return jnp.concatenate(outs, axis=1)


if __name__ == "__main__":
    # input_size == hidden_size is required by the module's own matmul shapes.
    B, S, D = 2, 8, 32

    key = jax.random.PRNGKey(0)
    kx, kf, kc, kg, kbf, kbc, kbg = jax.random.split(key, 7)

    x = jax.random.normal(kx, (B, S, D), dtype=jnp.float32)
    W_f = jax.random.normal(kf, (D, D), dtype=jnp.float32)
    W_c = jax.random.normal(kc, (D, D), dtype=jnp.float32)
    W_g = jax.random.normal(kg, (D, D), dtype=jnp.float32)
    b_f = jax.random.normal(kbf, (D,), dtype=jnp.float32)
    b_c = jax.random.normal(kbc, (D,), dtype=jnp.float32)
    b_g = jax.random.normal(kbg, (D,), dtype=jnp.float32)

    out = mlgru_layer(x, W_f, W_c, W_g, b_f, b_c, b_g)
    out = jax.block_until_ready(out)

    ref = _reference(x, W_f, W_c, W_g, b_f, b_c, b_g)
    ref = jax.block_until_ready(ref)

    assert out.shape == (B, S, D)
    assert np.all(np.isfinite(np.asarray(out)))
    assert np.allclose(np.asarray(out), np.asarray(ref), atol=1e-3, rtol=1e-3)

    print("KERNEL_OK")
</pallas_src>

<mosaic_0001>
module attributes {stable_mosaic.version = 11 : i64} {
  func.func @_mlgru_kernel(%arg0: i32, %arg1: memref<1x2x32xf32, #tpu.memory_space<vmem>>, %arg2: memref<32x96xbf16, #tpu.memory_space<vmem>>, %arg3: memref<1x96xf32, #tpu.memory_space<vmem>>, %arg4: memref<1x2x32xf32, #tpu.memory_space<vmem>>, %arg5: memref<2x32xf32, #tpu.memory_space<vmem>>) attributes {dimension_semantics = [#tpu.dimension_semantics<arbitrary>], iteration_bounds = array<i64: 8>, scalar_prefetch = 0 : i64, scratch_operands = 1 : i64, tpu.core_type = #tpu.core_type<tc>, window_params = [{transform_indices = @transform_0, window_bounds = array<i64: 1, 2, 32>}, {pipeline_mode = #tpu.pipeline_mode<synchronous>, transform_indices = @transform_1, window_bounds = array<i64: 32, 96>}, {pipeline_mode = #tpu.pipeline_mode<synchronous>, transform_indices = @transform_2, window_bounds = array<i64: 1, 96>}, {transform_indices = @transform_3, window_bounds = array<i64: 1, 2, 32>}]} {
    %c0_i32 = arith.constant 0 : i32
    %0 = arith.cmpi eq, %arg0, %c0_i32 : i32
    %1 = arith.extui %0 : i1 to i32
    %c0_i32_0 = arith.constant 0 : i32
    %2 = arith.cmpi ne, %1, %c0_i32_0 : i32
    scf.if %2 {
      %cst_33 = arith.constant 0.000000e+00 : f32
      %83 = vector.broadcast %cst_33 : f32 to vector<2x32xf32>
      %c0_34 = arith.constant 0 : index
      %c0_35 = arith.constant 0 : index
      %84 = vector.load %arg5[%c0_34, %c0_35] : memref<2x32xf32, #tpu.memory_space<vmem>>, vector<2x32xf32>
      tpu.vector_store %arg5[%c0_34, %c0_35], %83 {strides = array<i32>} : memref<2x32xf32, #tpu.memory_space<vmem>>, vector<2x32xf32>,
    } else {
    }
    %c0 = arith.constant 0 : index
    %c0_1 = arith.constant 0 : index
    %c0_2 = arith.constant 0 : index
    %3 = vector.load %arg1[%c0, %c0_1, %c0_2] : memref<1x2x32xf32, #tpu.memory_space<vmem>>, vector<1x2x32xf32>
    %4 = vector.shape_cast %3 : vector<1x2x32xf32> to vector<2x32xf32>
    %cst = arith.constant dense<0.000000e+00> : vector<2xf32>
    %5 = vector.multi_reduction <add>, %4, %cst [1] : vector<2x32xf32> to vector<2xf32>
    %6 = vector.shape_cast %5 : vector<2xf32> to vector<2x1xf32>
    %cst_3 = arith.constant 3.200000e+01 : f32
    %7 = vector.broadcast %cst_3 : f32 to vector<2x1xf32>
    %8 = arith.divf %6, %7 : vector<2x1xf32>
    %9 = vector.broadcast %8 : vector<2x1xf32> to vector<2x32xf32>
    %10 = arith.subf %4, %9 : vector<2x32xf32>
    %11 = arith.mulf %10, %10 : vector<2x32xf32>
    %cst_4 = arith.constant dense<0.000000e+00> : vector<2xf32>
    %12 = vector.multi_reduction <add>, %11, %cst_4 [1] : vector<2x32xf32> to vector<2xf32>
    %13 = vector.shape_cast %12 : vector<2xf32> to vector<2x1xf32>
    %cst_5 = arith.constant 3.200000e+01 : f32
    %14 = vector.broadcast %cst_5 : f32 to vector<2x1xf32>
    %15 = arith.divf %13, %14 : vector<2x1xf32>
    %cst_6 = arith.constant 9.99999993E-9 : f32
    %16 = vector.broadcast %cst_6 : f32 to vector<2x1xf32>
    %17 = arith.addf %15, %16 : vector<2x1xf32>
    %cst_7 = arith.constant 1.000000e-10 : f32
    %18 = vector.broadcast %cst_7 : f32 to vector<2x1xf32>
    %19 = arith.maximumf %17, %18 : vector<2x1xf32>
    %20 = math.rsqrt %19 : vector<2x1xf32>
    %21 = vector.broadcast %8 : vector<2x1xf32> to vector<2x32xf32>
    %22 = arith.subf %4, %21 : vector<2x32xf32>
    %23 = vector.broadcast %20 : vector<2x1xf32> to vector<2x32xf32>
    %24 = arith.mulf %23, %22 : vector<2x32xf32>
    %25 = arith.cmpf one, %24, %24 : vector<2x32xf32>
    %cst_8 = arith.constant 0.000000e+00 : f32
    %26 = vector.broadcast %cst_8 : f32 to vector<2x32xf32>
    %27 = arith.select %25, %26, %24 : vector<2x32xi1>, vector<2x32xf32>
    %28 = math.absf %27 : vector<2x32xf32>
    %29 = vector.shape_cast %28 : vector<2x32xf32> to vector<1x2x32xf32>
    %cst_9 = arith.constant dense<0xFF800000> : vector<1xf32>
    %30 = vector.multi_reduction <maximumf>, %29, %cst_9 [1, 2] : vector<1x2x32xf32> to vector<1xf32>
    %31 = vector.shape_cast %30 : vector<1xf32> to vector<1x1x1xf32>
    %32 = vector.extract %31[0, 0, 0] : f32 from vector<1x1x1xf32>
    %cst_10 = arith.constant 0.000000e+00 : f32
    %33 = arith.cmpf ogt, %32, %cst_10 : f32
    %cst_11 = arith.constant 0.00787401571 : f32
    %34 = arith.mulf %32, %cst_11 : f32
    %cst_12 = arith.constant 1.000000e+00 : f32
    %35 = arith.select %33, %34, %cst_12 : f32
    %cst_13 = arith.constant 1.270000e+02 : f32
    %36 = arith.divf %cst_13, %32 : f32
    %cst_14 = arith.constant 1.000000e+00 : f32
    %37 = arith.select %33, %36, %cst_14 : f32
    %38 = vector.broadcast %37 : f32 to vector<2x32xf32>
    %39 = arith.mulf %27, %38 : vector<2x32xf32>
    %40 = math.roundeven %39 : vector<2x32xf32>
    %cst_15 = arith.constant -1.280000e+02 : f32
    %cst_16 = arith.constant 1.270000e+02 : f32
    %41 = vector.broadcast %cst_15 : f32 to vector<2x32xf32>
    %42 = arith.maximumf %41, %40 : vector<2x32xf32>
    %43 = vector.broadcast %cst_16 : f32 to vector<2x32xf32>
    %44 = arith.minimumf %43, %42 : vector<2x32xf32>
    %45 = arith.truncf %44 : vector<2x32xf32> to vector<2x32xbf16>
    %c0_17 = arith.constant 0 : index
    %c0_18 = arith.constant 0 : index
    %46 = vector.load %arg2[%c0_17, %c0_18] : memref<32x96xbf16, #tpu.memory_space<vmem>>, vector<32x96xbf16>
    %cst_19 = arith.constant dense<0.000000e+00> : vector<2x96xf32>
    %47 = tpu.matmul %45, %46, %cst_19 {dimension_numbers = #tpu.dot_dimension_numbers<[1], [0], [0], [1], [0, 0, 1, 1], [], []>} : vector<2x32xbf16>, vector<32x96xbf16>, vector<2x96xf32> -> vector<2x96xf32>
    %48 = vector.broadcast %35 : f32 to vector<2x96xf32>
    %49 = arith.mulf %47, %48 : vector<2x96xf32>
    %c0_20 = arith.constant 0 : index
    %c0_21 = arith.constant 0 : index
    %50 = vector.load %arg3[%c0_20, %c0_21] : memref<1x96xf32, #tpu.memory_space<vmem>>, vector<1x96xf32>
    %51 = vector.broadcast %50 : vector<1x96xf32> to vector<2x96xf32>
    %52 = arith.addf %49, %51 : vector<2x96xf32>
    %53 = vector.extract_strided_slice %52 {offsets = [0, 0], sizes = [2, 32], strides = [1, 1]} : vector<2x96xf32> to vector<2x32xf32>
    %54 = vector.extract_strided_slice %52 {offsets = [0, 32], sizes = [2, 32], strides = [1, 1]} : vector<2x96xf32> to vector<2x32xf32>
    %55 = vector.extract_strided_slice %52 {offsets = [0, 64], sizes = [2, 32], strides = [1, 1]} : vector<2x96xf32> to vector<2x32xf32>
    %56 = arith.negf %53 : vector<2x32xf32>
    %57 = math.exp %56 : vector<2x32xf32>
    %cst_22 = arith.constant 1.000000e+00 : f32
    %58 = vector.broadcast %cst_22 : f32 to vector<2x32xf32>
    %59 = arith.addf %58, %57 : vector<2x32xf32>
    %60 = arith.divf %58, %59 : vector<2x32xf32>
    %61 = arith.negf %54 : vector<2x32xf32>
    %62 = math.exp %61 : vector<2x32xf32>
    %cst_23 = arith.constant 1.000000e+00 : f32
    %63 = vector.broadcast %cst_23 : f32 to vector<2x32xf32>
    %64 = arith.addf %63, %62 : vector<2x32xf32>
    %65 = arith.divf %63, %64 : vector<2x32xf32>
    %66 = arith.mulf %54, %65 : vector<2x32xf32>
    %67 = arith.negf %55 : vector<2x32xf32>
    %68 = math.exp %67 : vector<2x32xf32>
    %cst_24 = arith.constant 1.000000e+00 : f32
    %69 = vector.broadcast %cst_24 : f32 to vector<2x32xf32>
    %70 = arith.addf %69, %68 : vector<2x32xf32>
    %71 = arith.divf %69, %70 : vector<2x32xf32>
    %c0_25 = arith.constant 0 : index
    %c0_26 = arith.constant 0 : index
    %72 = vector.load %arg5[%c0_25, %c0_26] : memref<2x32xf32, #tpu.memory_space<vmem>>, vector<2x32xf32>
    %73 = arith.mulf %60, %72 : vector<2x32xf32>
    %cst_27 = arith.constant 1.000000e+00 : f32
    %74 = vector.broadcast %cst_27 : f32 to vector<2x32xf32>
    %75 = arith.subf %74, %60 : vector<2x32xf32>
    %76 = arith.mulf %75, %66 : vector<2x32xf32>
    %77 = arith.addf %73, %76 : vector<2x32xf32>
    %c0_28 = arith.constant 0 : index
    %c0_29 = arith.constant 0 : index
    %78 = vector.load %arg5[%c0_28, %c0_29] : memref<2x32xf32, #tpu.memory_space<vmem>>, vector<2x32xf32>
    tpu.vector_store %arg5[%c0_28, %c0_29], %77 {strides = array<i32>} : memref<2x32xf32, #tpu.memory_space<vmem>>, vector<2x32xf32>,
    %79 = arith.mulf %77, %71 : vector<2x32xf32>
    %c0_30 = arith.constant 0 : index
    %c0_31 = arith.constant 0 : index
    %c0_32 = arith.constant 0 : index
    %80 = vector.load %arg4[%c0_30, %c0_31, %c0_32] : memref<1x2x32xf32, #tpu.memory_space<vmem>>, vector<1x2x32xf32>
    %81 = vector.shape_cast %80 : vector<1x2x32xf32> to vector<2x32xf32>
    %82 = vector.shape_cast %79 : vector<2x32xf32> to vector<1x2x32xf32>
    tpu.vector_store %arg4[%c0_30, %c0_31, %c0_32], %82 {strides = array<i32>} : memref<1x2x32xf32, #tpu.memory_space<vmem>>, vector<1x2x32xf32>,
    return
  }
  func.func @transform_0(%arg0: i32) -> (i32, i32, i32) {
    %c0_i32 = arith.constant 0 : i32
    %c0_i32_0 = arith.constant 0 : i32
    %c0_i32_1 = arith.constant 0 : i32
    return %arg0, %c0_i32, %c0_i32_0 : i32, i32, i32
  }
  func.func @transform_1(%arg0: i32) -> (i32, i32) {
    %c0_i32 = arith.constant 0 : i32
    %c0_i32_0 = arith.constant 0 : i32
    %c0_i32_1 = arith.constant 0 : i32
    return %c0_i32, %c0_i32_0 : i32, i32
  }
  func.func @transform_2(%arg0: i32) -> (i32, i32) {
    %c0_i32 = arith.constant 0 : i32
    %c0_i32_0 = arith.constant 0 : i32
    %c0_i32_1 = arith.constant 0 : i32
    return %c0_i32, %c0_i32_0 : i32, i32
  }
  func.func @transform_3(%arg0: i32) -> (i32, i32, i32) {
    %c0_i32 = arith.constant 0 : i32
    %c0_i32_0 = arith.constant 0 : i32
    %c0_i32_1 = arith.constant 0 : i32
    return %arg0, %c0_i32, %c0_i32_0 : i32, i32, i32
  }
}

</mosaic_0001>

<bundles_post_ra>
// kernel: tpu_custom_call.1
= control target key start
LH: loop header
LB: loop body
LE: loop exit
PB: predicated region body
PF: predicated region fallthrough
CT: control target
= control target key end

     0   :  { %8 = vsyncpa [#allocation4], 0  ;;  %s879_s0 = inlined_call_operand.hbm [shape: f32[8,2,32], index: 0, kind: input, shape index: {}]   ;;  %s880_s1 = inlined_call_operand.hbm [shape: bf16[32,96], index: 1, kind: input, shape index: {}]   ;;  %s881_s2 = inlined_call_operand.vmem [shape: f32[1,96], index: 2, kind: input, shape index: {}]   ;;  %s882_s3 = inlined_call_operand.hbm [shape: f32[8,2,32], index: 3, kind: output, shape index: {}]  }
   0x1   :  { %10 = vsyncpa [#allocation4 + $0x1], 0 }
   0x2   :  { %11 = vsyncpa [#allocation7], 0 }
   0x3   :  { %12 = vsyncpa [#allocation5], 0 }
   0x4   :  { %14 = vsyncpa [#allocation5 + $0x1], 0  ;;  %s710_s12 = smov 0   ;;  %s712_s13 = smov 0  }
   0x5   :  { %s714_s14 = smov 0   ;;  %s716_s15 = smov 0  }
   0x6 LB: > { %s731_s16 = sadd.s32 4294967295, %s678_s15   ;;  %s439_s17 = sadd.s32 4294967294, %s678_s15   ;;  %s678_s15 = sphi %s716_s15, %s904_s15   ;;  %s674_s14 = sphi %s714_s14, %s903_s14   ;;  %s670_s13 = sphi %s712_s13, %s902_s13   ;;  %s666_s12 = sphi %s710_s12, %s901_s12  }
   0x7   : > { %p40_p0 = scmp.ne.s32.totalorder %s670_s13, %s666_s12  ;;  %p883_p1 = scmp.eq.s32.totalorder %s731_s16, 0 }
   0x8   : > { %p112_p3 = scmp.eq.s32.totalorder %s439_s17, 7  ;;  %p440_p5 = scmp.ge.s32.totalorder %s678_s15, 1 }
   0x9   : > { %p740_p4 = por %p883_p1, %p40_p0  ;;  %p119_p7 = scmp.lt.s32.totalorder %s678_s15, 9 }
   0xa   : > { %p745_p6 = por %p112_p3, %p40_p0  ;;  %s680_s21 = smov [#allocation6]  }
   0xb   : > { %s887_s18 = scalar_select %p740_p4, 1, 0 }
   0xc   : > { %s888_s19 = scalar_select %p745_p6, 1, 0 }
   0xd   : > { %p751_p9 = pnand %p440_p5, %p119_p7  ;;  %s131_s22 = sshll.u32 %s680_s21, 4  ;;  %s132_s22 = int_to_ptr.vmem [resolvable:$true] %s131_s22 }
   0xe   : > { %s764_s24 = sadd.s32 1, %s678_s15   ;;  %s27_s25 = sadd.s32 1, %s674_s14 }
   0xf   : > { %s889_s20 = scalar_select %p751_p9, 1, 0 }
  0x10   : > { %p490_p10 = pneg %p751_p9  ;;  %s24_s26 = ssub.s32 %s678_s15, %s764_s24 }
  0x11   : > { %s567_s27 = scalar_lea.vmem %s132_s22, 256  ;;  %p575_p5 = scmp.lt.s32.totalorder %s132_s22, %s132_s22 }
  0x12   : > { %p759_p11 = pnand %p490_p10, %p883_p1  ;;  %p568_p13 = scmp.ne.s32.totalorder %s132_s22, %s567_s27 }
  0x13   : > { %p576_p7 = scmp.lt.s32.totalorder %s567_s27, %s567_s27 }
  0x14   : > { %p558_p12 = pneg %p759_p11 }
  0x15   : > { %p577_p8 = por %p576_p7, %p575_p5 }
  0x16   : > { %p570_p0 = pnand %p568_p13, %p558_p12 }
  0x18   : > { %p571_p3 = pneg %p570_p0 }
  0x1a   : > { %p578_p2 = pnand %p577_p8, %p571_p3 }
  0x1c   : > { %581 = shalt.err (!%p578_p2)
}
  0x1d   : > { %s681_s28 = smov 64   ;;  %s682_s29 = smov 4  }
  0x1e   : > { %493 = dma.hbm_to_vmem [thread:$0]  (!%p759_p11), %s880_s1, 256, %s132_s22, [#allocation7], %s681_s28, %s681_s28, %s682_s29  }
  0x1f   : > { %p25_p10 = scmp.eq.s32.totalorder %s24_s26, 0  ;;  %p34_p12 = scmp.ne.s32.totalorder %s674_s14, %s670_s13 }
  0x20   : > { %p35_p8 = scmp.eq.s32.totalorder %s678_s15, 0  ;;  %p503_p2 = scmp.lt.s32.totalorder %s678_s15, 8 }
  0x21   : > { %s781_s5 = scalar_select %p25_p10, %s674_s14, %s27_s25  }
  0x22   : > { %p36_p13 = por %p35_p8, %p34_p12  ;;  %p891_p0 = scmp.eq.s32.totalorder %s731_s16, 7 }
  0x23   : > { %s148_s7 = sand.u32 1, %s674_s14   ;;  %s444_s8 = sshll.u32 %s678_s15, 5 }
  0x24   : > { %p785_p3 = por %p891_p0, %p34_p12  ;;  %s443_s9 = sshll.u32 %s148_s7, 1 }
  0x25   : > { %s794_s17 = scalar_lea.hbm %s879_s0, %s444_s8  ;;  %s152_s21 = scalar_lea.vmem [#allocation3], %s443_s9 }
  0x26   : > { %s892_s6 = scalar_select %p785_p3, 1, 0 }
  0x27   : > { %s159_s22 = sshll.u32 %s152_s21, 4  ;;  %p796_p11 = pnand %p503_p2, %p36_p13  ;;  %s160_s22 = int_to_ptr.vmem [resolvable:$true] %s159_s22 }
  0x28   : > { %s149_s25 = scalar_lea.sflag [#allocation4], %s148_s7  ;;  %s582_s26 = scalar_lea.hbm %s794_s17, 32 }
  0x29   : > { %p583_p5 = scmp.ne.s32.totalorder %s794_s17, %s582_s26  ;;  %p584_p7 = pneg %p796_p11 }
  0x2a   : > { %s587_s29 = scalar_lea.hbm %s879_s0, 256  ;;  %p588_p8 = scmp.lt.s32.totalorder %s794_s17, %s879_s0 }
  0x2b   : > { %p585_p10 = pnand %p584_p7, %p583_p5  ;;  %p589_p2 = scmp.lt.s32.totalorder %s587_s29, %s582_s26 }
  0x2d   : > { %p586_p12 = pneg %p585_p10  ;;  %p590_p13 = por %p589_p2, %p588_p8 }
  0x2f   : > { %p591_p0 = pnand %p590_p13, %p586_p12 }
  0x31   : > { %594 = shalt.err (!%p591_p0)
}
  0x32   : > { %s595_s8 = scalar_lea.vmem %s160_s22, 32  ;;  %s683_s7 = smov [#allocation3]  }
  0x33   : > { %p596_p1 = scmp.ne.s32.totalorder %s160_s22, %s595_s8  ;;  %s600_s9 = sshll.u32 %s683_s7, 4  ;;  %s601_s9 = int_to_ptr.vmem [resolvable:$false] %s600_s9 }
  0x34   : > { %s602_s10 = scalar_lea.vmem %s601_s9, 64  ;;  %p603_p5 = scmp.lt.s32.totalorder %s160_s22, %s601_s9 }
  0x35   : > { %p598_p6 = pnand %p596_p1, %p584_p7  ;;  %p604_p10 = scmp.lt.s32.totalorder %s602_s10, %s595_s8 }
  0x37   : > { %p599_p3 = pneg %p598_p6  ;;  %p605_p4 = por %p604_p10, %p603_p5 }
  0x39   : > { %p606_p9 = pnand %p605_p4, %p599_p3 }
  0x3b   : > { %609 = shalt.err (!%p606_p9)
}
  0x3c   : > { %497 = dma.hbm_to_vmem [thread:$0]  (!%p796_p11), %s794_s17, 32, %s160_s22, %s149_s25  }
  0x3d   : > { %p894_p12 = scmp.ne.s32.totalorder %s889_s20, 0 }
  0x3e   : > { %s817_s11 = sand.u32 (!%p894_p12), 1, %s670_s13   ;;  %p895_p1 = scmp.ne.s32.totalorder (!%p894_p12), %s887_s18, 0 }
  0x3f   : > { %168 = sbr.rel (%p894_p12) target bundleno = 1044 (0x414), region = 32  ;;  %s446_s21 = sshll.u32 (!%p894_p12), %s817_s11, 1 }
  0x40   : > { %s171_s26 = scalar_lea.sflag (!%p894_p12), [#allocation4], %s817_s11  ;;  %s174_s27 = scalar_lea.vmem (!%p894_p12), [#allocation3], %s446_s21 }
  0x44   : > { %653 = dma.done.wait (%p895_p1), %s171_s26, 32  }
  0x45   : > { %655 = vsyncadd (%p895_p1), %s171_s26, 4294967264  ;;  %p896_p4 = scmp.eq.s32.totalorder %s731_s16, 0 }
  0x47   : > { %657 = dma.done.wait (%p896_p4), [#allocation7], 256   ;;  %p897_p6 = pmov %p896_p4 }
  0x48   : > { %s829_s20 = scalar_lea.vmem [#allocation8], %s446_s21  ;;  %p898_p9 = scmp.ne.s32.totalorder %s731_s16, 0 }
  0x49   : > { %659 = vsyncadd (%p897_p6), [#allocation7], 4294967040 }
  0x4a   : > { %205 = sbr.rel (%p898_p9) target bundleno = 81 (0x51), region = 44 }
  0x4f   : > { %vm206_vm0 = vcmask 254976   ;;  %v684_v0 = vmov 0.0  }
  0x50   : > { %207 = vst.msk [vmem:[#allocation2] sm:$0x3] %vm206_vm0, %v684_v0 }
  0x51 PF: > { %v208_v1 = vld [vmem:[%s174_s27] sm:$0x3]  ;;  %vm209_vm1 = vcmask 254976   ;;  %v546_v24 = vld [vmem:[#allocation6 + $0x8] sm:$0xff]   ;;  %v685_v25 = vmov 0.0   ;;  %vm686_vm3 = vmmov 0  }
  0x52   : > { %v210_v2 = vsel %vm209_vm1, %v208_v1, 0.0  ;;  %462 = vmatprep.subr.bf16.mxu0 %v685_v25  ;;  %466 = vmatprep.mubr.msk.bf16.mxu0 %vm686_vm3, %v685_v25  ;;  %v547_v26 = vld [vmem:[#allocation6] sm:$0xff]   ;;  %vm268_vm5 = vcmask 261120   ;;  %v453_v43 = vld [vmem:[%s881_s2] ss:$0 sm:$0xff]  ;;  %s687_s29 = smov 64  }
  0x53   : > { %211 = vadd.xlane.f32.xlu0 %v210_v2  ;;  %463 = vmatpush3.bf16.msra.mxu0 %v546_v24  ;;  %s688_s30 = smov 96   ;;  %s456_s4 = sshll.u32 %s731_s16, 5 }
  0x54   : > { %464 = vmatprep.subr.bf16.mxu0 %v685_v25  ;;  %s359_s8 = sshll.u32 %s829_s20, 4  ;;  %s357_s10 = scalar_lea.hbm %s882_s3, %s456_s4  ;;  %s360_s8 = int_to_ptr.vmem [resolvable:$true] %s359_s8 }
  0x55   : > { %s346_s21 = scalar_lea.sflag [#allocation5], %s817_s11  ;;  %s610_s26 = scalar_lea.vmem %s360_s8, 32 }
  0x56   : > { %p611_p11 = scmp.ne.s32.totalorder %s360_s8, %s610_s26  ;;  %p899_p7 = scmp.ne.s32.totalorder %s892_s6, 0 }
  0x57   : > { %465 = vmatpush3.bf16.msra.mxu0 %v547_v26  ;;  %v329_v54 = vld [vmem:[#allocation2] sm:$0x3]  ;;  %s689_s16 = smov [#allocation8]  }
  0x58   : > { %p612_p8 = pnand %p611_p11, %p899_p7  ;;  %s614_s27 = sshll.u32 %s689_s16, 4  ;;  %s615_s27 = int_to_ptr.vmem [resolvable:$false] %s614_s27 }
  0x59   : > { %p617_p13 = scmp.lt.s32.totalorder %s360_s8, %s615_s27 }
  0x5a   : > { %p613_p2 = pneg %p612_p8 }
  0xdc   : > { %v212_v3 = vpop.xlane.xlu0 %211 }
  0xdd   : > { %v214_v4 = vmul.f32 0.03125, %v212_v3 }
  0xdf   : > { %v215_v5 = vsub.f32 %v208_v1, %v214_v4 }
  0xe1   : > { %v216_v6 = vmul.f32 %v215_v5, %v215_v5 }
  0xe3   : > { %v217_v7 = vsel %vm209_vm1, %v216_v6, 0.0 }
  0xe4   : > { %218 = vadd.xlane.f32.xlu0 %v217_v7 }
 0x16d   : > { %v219_v8 = vpop.xlane.xlu0 %218 }
 0x16e   : > { %v220_v9 = vmul.f32 0.03125, %v219_v8 }
 0x170   : > { %v221_v10 = vadd.f32 1e-08, %v220_v9 }
 0x172   : > { %v222_v11 = vmax.f32 %v221_v10, 1e-10 }
 0x174   : > { %548 = vrsqrt.f32 %v222_v11 }
 0x181   : > { %v549_v12 = vpop.eup %548 }
 0x182   : > { %v224_v13 = vmul.f32 %v549_v12, %v215_v5 }
 0x184   : > { %vm225_vm2 = vcmp.ne.f32.partialorder %v224_v13, %v224_v13 }
 0x185   : > { %v226_v14 = vsel %vm225_vm2, 0.0, %v224_v13 }
 0x186   : > { %v227_v15 = vand.u32 2147483647, %v226_v14 }
 0x188   : > { %v228_v16 = vsel %vm209_vm1, %v227_v15, -inf }
 0x189   : > { %229 = vmax.xlane.f32.xlu1 %v228_v16 }
 0x212   : > { %v230_v17 = vpop.xlane.xlu1 %229 }
 0x213   : > { %v231_v18 = vrot.slane %v230_v17, 4 }
 0x215   : > { %v232_v19 = vmax.f32 %v230_v17, %v231_v18 }
 0x217   : > { %v233_v20 = vrot.slane %v232_v19, 2 }
 0x219   : > { %v234_v21 = vmax.f32 %v232_v19, %v233_v20 }
 0x21b   : > { %v235_v22 = vrot.slane %v234_v21, 1 }
 0x21d   : > { %v236_v23 = vmax.f32 %v234_v21, %v235_v22 }
 0x21f   : > { %470 = vpush %v236_v23 }
 0x250   : > { %s471_s18 = spop %470 }
 0x251   : > { %v241_v27 = vstv %s471_s18  ;;  %p238_p3 = scmp.gt.f32.partialorder %s471_s18, 0.0  ;;  %s239_s23 = smul.f32 0.007874016, %s471_s18 }
 0x252   : > { %550 = vrcp.f32 %v241_v27  ;;  %s616_s18 = scalar_lea.vmem %s615_s27, 64 }
 0x253   : > { %s908_s23 = smov (!%p238_p3, %s239_s23), 1.0  ;;  %p618_p0 = scmp.lt.s32.totalorder %s616_s18, %s610_s26 }
 0x254   : > { %v312_v42 = vstv %s908_s23 }
 0x255   : > { %p619_p5 = por %p618_p0, %p617_p13 }
 0x257   : > { %p620_p10 = pnand %p619_p5, %p613_p2 }
 0x25f   : > { %v551_v28 = vpop.eup %550 }
 0x260   : > { %472 = vpush %v551_v28 }
 0x291   : > { %s473_s17 = spop %472 }
 0x292   : > { %s244_s22 = smul.f32 127.0, %s473_s17 }
 0x294   : > { %s906_s22 = smov (!%p238_p3, %s244_s22), 1.0 }
 0x295   : > { %v246_v29 = vstv %s906_s22 }
 0x296   : > { %v247_v30 = vmul.f32 %v246_v29, %v226_v14 }
 0x298   : > { %v476_v31 = vcvt.f32.s32 %v247_v30  ;;  %v474_v33 = vand.u32 2147483647, %v247_v30  ;;  %v479_v35 = vand.u32 2147483648, %v247_v30 }
 0x29a   : > { %v477_v32 = vcvt.s32.f32 %v476_v31  ;;  %vm475_vm4 = vcmp.lt.f32.partialorder %v474_v33, 8388608.0 }
 0x29c   : > { %v478_v34 = vand.u32 2147483647, %v477_v32 }
 0x29e   : > { %v480_v36 = vor.u32 %v479_v35, %v478_v34 }
 0x2a0   : > { %v481_v37 = vsel %vm475_vm4, %v480_v36, %v247_v30 }
 0x2a1   : > { %v249_v38 = vmax.f32 %v481_v37, -128.0 }
 0x2a3   : > { %v250_v39 = vmin.f32 %v249_v38, 127.0 }
 0x2a5   : > { %v251_v40 = vpack.c.bf16 %v250_v39, %v250_v39 }
 0x2a7   : > { %467 = vmatmul.mubr.msk.bf16.vlgmr.msra.gmra.mxu0 %vm268_vm5, %v251_v40 }
 0x367   : > { %v306_v41 = vpop.f32.mrf.mxu0 }
 0x368   : > { %v313_v44 = vmul.f32 %v312_v42, %v306_v41 }
 0x369   : > { %v468_v45 = vpop.f32.mrf.mxu0 }
 0x36a   : > { %v321_v46 = vadd.f32 %v453_v43, %v313_v44 }
 0x36b   : > { %v309_v47 = vpop.f32.mrf.mxu0 }
 0x36c   : > { %v454_v48 = vmul.f32 -1.442695, %v321_v46 }
 0x36d   : > { %v469_v49 = vpop.f32.mrf.mxu0 }
 0x36e   : > { %552 = vpow2.f32 %v454_v48 }
 0x37b   : > { %v553_v50 = vpop.eup %552 }
 0x37c   : > { %v325_v51 = vadd.f32 1.0, %v553_v50 }
 0x37e   : > { %554 = vrcp.f32 %v325_v51 }
 0x38b   : > { %v555_v52 = vpop.eup %554 }
 0x38c   : > { %340 = vrot.lane.b32.xlu0 %v555_v52, %s687_s29  ;;  %v328_v53 = vmul.f32 %v555_v52, %v321_v46  ;;  %v331_v55 = vsub.f32 1.0, %v555_v52  ;;  %v330_v57 = vmul.f32 %v555_v52, %v329_v54 }
 0x38e   : > { %333 = vrot.lane.b32.xlu1 %v328_v53, %s688_s30 }
 0x3fe   : > { %v341_v60 = vpop.permute.xlu0 %340 }
 0x400   : > { %v334_v56 = vpop.permute.xlu1 %333 }
 0x401   : > { %v336_v58 = vmul.f32 %v334_v56, %v331_v55 }
 0x403   : > { %v337_v59 = vadd.f32 %v336_v58, %v330_v57 }
 0x405   : > { %338 = vst.msk [vmem:[#allocation2] sm:$0x3] %vm209_vm1, %v337_v59  ;;  %v343_v61 = vmul.f32 %v341_v60, %v337_v59 }
 0x407   : > { %344 = vst.msk [vmem:[%s829_s20] sm:$0x3] %vm209_vm1, %v343_v61 }
 0x408   : > { %623 = shalt.err (!%p620_p10)
}
 0x409   : > { %s624_s17 = scalar_lea.hbm %s357_s10, 32  ;;  %s628_s22 = scalar_lea.hbm %s882_s3, 256 }
 0x40a   : > { %p625_p12 = scmp.ne.s32.totalorder %s357_s10, %s624_s17  ;;  %p629_p6 = scmp.lt.s32.totalorder %s357_s10, %s882_s3 }
 0x40b   : > { %p630_p9 = scmp.lt.s32.totalorder %s628_s22, %s624_s17 }
 0x40c   : > { %p626_p1 = pnand %p625_p12, %p899_p7 }
 0x40d   : > { %p631_p3 = por %p630_p9, %p629_p6 }
 0x40e   : > { %p627_p4 = pneg %p626_p1 }
 0x410   : > { %p632_p11 = pnand %p631_p3, %p627_p4 }
 0x412   : > { %635 = shalt.err (!%p632_p11)
}
 0x413   : > { %488 = dma.vmem_to_hbm [thread:$0]  (%p899_p7), %s360_s8, 32, %s357_s10, %s346_s21  }
 0x414 PF: > { %p505_p8 = scmp.ge.s32.totalorder %s678_s15, 2  ;;  %s371_s28 = sand.u32 1, %s666_s12  }
 0x415   : > { %p900_p2 = scmp.ne.s32.totalorder %s888_s19, 0  ;;  %s372_s29 = scalar_lea.sflag [#allocation5], %s371_s28 }
 0x417   : > { %p499_p13 = pnand %p505_p8, %p900_p2 }
 0x419   : > { %p500_p0 = pneg %p499_p13 }
 0x41b   : > { %661 = dma.done.wait (%p500_p0), %s372_s29, 32  }
 0x41c   : > { %663 = vsyncadd (%p500_p0), %s372_s29, 4294967264  ;;  %p17_p5 = scmp.ge.s32.totalorder %s764_s24, 10   ;;  %s901_s12 = smov %s670_s13 }
 0x41d   : > { %s902_s13 = smov %s674_s14  ;;  %s903_s14 = smov %s781_s5 }
 0x41e   : > { %s904_s15 = smov %s764_s24  ;;  %19 = sbr.rel (!%p17_p5) target bundleno = 6 (0x6), region = 85 }
 0x423   :  { %377 = vsyncpa [#allocation4], 1 }
 0x424   :  { %379 = vsyncpa [#allocation4 + $0x1], 1 }
 0x425   :  { %380 = vsyncpa [#allocation7], 1 }
 0x426   :  { %381 = vsyncpa [#allocation5], 1 }
 0x427   :  { %383 = vsyncpa [#allocation5 + $0x1], 1 }

</bundles_post_ra>
